<compile_context>
chip_gen: v6e
topology: v6e:2x2x1
jax: 0.10.0
libtpu: 0.0.40
codegen_flags: <defaults>
</compile_context>

<pallas_src>
import jax
import jax.numpy as jnp
from jax.experimental import pallas as pl
from jax.experimental.pallas import tpu as pltpu


def _round_up(v, m):
    return pl.cdiv(v, m) * m


def conv2d_3x3_valid_nchw(x, w, b, *, stream_dtype=jnp.bfloat16):
    """Valid KHxKW conv, stride 1, NCHW in / NCHW out, streaming x once (no im2col)."""
    N, Cin, H, W = x.shape
    Cout, Cin_w, KH, KW = w.shape
    assert Cin_w == Cin
    Ho, Wo = H - KH + 1, W - KW + 1
    HW = H * W
    # Flattened-image trick: output (i, j) lives at flat index i*W + j, and tap
    # (kh, kw) is the contiguous slice [kh*W + kw, kh*W + kw + L) of the image.
    L = (Ho - 1) * W + Wo                # covers all valid outputs, always in bounds
    Lp = _round_up(Ho * W, 128)          # lane-padded output slab
    Cinp = _round_up(max(Cin, 8), 8)     # sublane/MXU-aligned contraction dim
    Coutp = _round_up(max(Cout, 8), 8)   # sublane-aligned output channels

    # ---- wrapper-side layout plumbing (no im2col, no transposes of x) ----
    x_flat = x.reshape(N, Cin, HW).astype(stream_dtype)            # free reshape + cast
    w_taps = w.transpose(2, 3, 0, 1).reshape(KH * KW, Cout, Cin)   # tiny
    w_taps = jnp.pad(w_taps, ((0, 0), (0, Coutp - Cout), (0, Cinp - Cin)))
    w_taps = w_taps.astype(stream_dtype)
    b_col = jnp.pad(b.astype(jnp.float32), (0, Coutp - Cout)).reshape(Coutp, 1)

    def kernel(x_ref, w_ref, b_ref, o_ref, xpad_ref):
        # Stage the (Cin, H*W) image into a sublane-padded VMEM tile so every tap
        # dot is a fully aligned (Coutp, Cinp) x (Cinp, L) matmul.
        xpad_ref[:Cin, :] = x_ref[0]
        if Cinp > Cin:
            # Padded rows meet zero weight columns, but must be finite (0*NaN=NaN).
            xpad_ref[Cin:, :] = jnp.zeros((Cinp - Cin, HW), stream_dtype)

        acc = jnp.zeros((Coutp, L), jnp.float32)
        for t in range(KH * KW):                     # 9 unrolled taps
            kh, kw = divmod(t, KW)
            off = kh * W + kw
            acc = acc + jnp.dot(w_ref[t], xpad_ref[:, off:off + L],
                                preferred_element_type=jnp.float32)
        o_ref[0, :, :L] = (acc + b_ref[...]).astype(o_ref.dtype)

    flops = 2 * N * Ho * Wo * Cout * Cin * KH * KW
    bytes_accessed = (N * Cin * HW * x_flat.dtype.itemsize
                      + w_taps.size * w_taps.dtype.itemsize
                      + Coutp * 4
                      + N * Coutp * Lp * 4)

    out_slab = pl.pallas_call(
        kernel,
        out_shape=jax.ShapeDtypeStruct((N, Coutp, Lp), jnp.float32),
        grid=(N,),
        in_specs=[
            pl.BlockSpec((1, Cin, HW), lambda n: (n, 0, 0)),             # one image/step
            pl.BlockSpec((KH * KW, Coutp, Cinp), lambda n: (0, 0, 0)),   # weights resident
            pl.BlockSpec((Coutp, 1), lambda n: (0, 0)),                  # bias resident
        ],
        out_specs=pl.BlockSpec((1, Coutp, Lp), lambda n: (n, 0, 0)),
        scratch_shapes=[pltpu.VMEM((Cinp, HW), stream_dtype)],
        compiler_params=pltpu.CompilerParams(
            dimension_semantics=("parallel",),       # v7x: two TCs split the batch
        ),
        cost_estimate=pl.CostEstimate(flops=flops, transcendentals=0,
                                      bytes_accessed=bytes_accessed),
    )(x_flat, w_taps, b_col)

    # Un-pad / re-window to NCHW.  TODO(synk): a consumer that accepts the raw
    # channel-major slab (N, Cout, Ho*W) could skip this output pass entirely.
    out = out_slab[:, :Cout, :Ho * W].reshape(N, Cout, Ho, W)[:, :, :, :Wo]
    return out


@jax.jit
def model_forward(x, params):
    s = conv2d_3x3_valid_nchw(x, params["w1"], params["b1"])
    # TODO(synk): conv2/bn/cat/relu from the reference forward are dead w.r.t. the
    # returned tensor `s` (and the cat of mismatched spatial shapes would raise in
    # torch); they are elided here, which also skips BatchNorm running-stat updates.
    return s


if __name__ == "__main__":
    key = jax.random.PRNGKey(0)
    k_x, k_w, k_b = jax.random.split(key, 3)

    # Small shapes consistent with the module: Conv2d(3, 3, 3) on an NCHW input.
    N, C, H, W = 2, 3, 8, 8
    x = jax.random.normal(k_x, (N, C, H, W), jnp.float32)
    params = {
        "w1": 0.1 * jax.random.normal(k_w, (3, 3, 3, 3), jnp.float32),
        "b1": 0.1 * jax.random.normal(k_b, (3,), jnp.float32),
    }

    s = model_forward(x, params)
    s = jax.block_until_ready(s)

    # Reference 1: same bf16-rounded operands, f32 accumulation (matches the
    # kernel's streamed precision) -> tight tolerance.
    ref_bf16 = jax.lax.conv_general_dilated(
        x.astype(jnp.bfloat16), params["w1"].astype(jnp.bfloat16),
        window_strides=(1, 1), padding="VALID",
        dimension_numbers=("NCHW", "OIHW", "NCHW"),
        preferred_element_type=jnp.float32,
    ) + params["b1"].reshape(1, 3, 1, 1)
    # Reference 2: pure f32 conv -> loose tolerance bounding bf16 rounding.
    ref_f32 = jax.lax.conv_general_dilated(
        x, params["w1"], window_strides=(1, 1), padding="VALID",
        dimension_numbers=("NCHW", "OIHW", "NCHW"),
    ) + params["b1"].reshape(1, 3, 1, 1)

    assert s.shape == ref_f32.shape, (s.shape, ref_f32.shape)
    assert jnp.allclose(s, ref_bf16, atol=5e-3, rtol=5e-3), "mismatch vs bf16 reference"
    assert jnp.allclose(s, ref_f32, atol=5e-2, rtol=5e-2), "mismatch vs f32 reference"

    print("KERNEL_OK")
</pallas_src>

<mosaic_0001>
module attributes {stable_mosaic.version = 11 : i64} {
  func.func @kernel(%arg0: i32, %arg1: memref<1x3x64xbf16, #tpu.memory_space<vmem>>, %arg2: memref<9x8x8xbf16, #tpu.memory_space<vmem>>, %arg3: memref<8x1xf32, #tpu.memory_space<vmem>>, %arg4: memref<1x8x128xf32, #tpu.memory_space<vmem>>, %arg5: memref<8x64xbf16, #tpu.memory_space<vmem>>) attributes {dimension_semantics = [#tpu.dimension_semantics<parallel>], iteration_bounds = array<i64: 2>, scalar_prefetch = 0 : i64, scratch_operands = 1 : i64, tpu.core_type = #tpu.core_type<tc>, window_params = [{transform_indices = @transform_0, window_bounds = array<i64: 1, 3, 64>}, {pipeline_mode = #tpu.pipeline_mode<synchronous>, transform_indices = @transform_1, window_bounds = array<i64: 9, 8, 8>}, {pipeline_mode = #tpu.pipeline_mode<synchronous>, transform_indices = @transform_2, window_bounds = array<i64: 8, 1>}, {transform_indices = @transform_3, window_bounds = array<i64: 1, 8, 128>}]} {
    %c0 = arith.constant 0 : index
    %c0_0 = arith.constant 0 : index
    %c0_1 = arith.constant 0 : index
    %0 = vector.load %arg1[%c0, %c0_0, %c0_1] : memref<1x3x64xbf16, #tpu.memory_space<vmem>>, vector<1x3x64xbf16>
    %1 = vector.shape_cast %0 : vector<1x3x64xbf16> to vector<3x64xbf16>
    %c0_2 = arith.constant 0 : index
    %c0_3 = arith.constant 0 : index
    %2 = vector.load %arg5[%c0_2, %c0_3] : memref<8x64xbf16, #tpu.memory_space<vmem>>, vector<3x64xbf16>
    tpu.vector_store %arg5[%c0_2, %c0_3], %1 {strides = array<i32>} : memref<8x64xbf16, #tpu.memory_space<vmem>>, vector<3x64xbf16>,
    %cst = arith.constant 0.000000e+00 : bf16
    %3 = vector.broadcast %cst : bf16 to vector<5x64xbf16>
    %c3 = arith.constant 3 : index
    %c0_4 = arith.constant 0 : index
    %4 = vector.load %arg5[%c3, %c0_4] : memref<8x64xbf16, #tpu.memory_space<vmem>>, vector<5x64xbf16>
    tpu.vector_store %arg5[%c3, %c0_4], %3 {strides = array<i32>} : memref<8x64xbf16, #tpu.memory_space<vmem>>, vector<5x64xbf16>,
    %cst_5 = arith.constant 0.000000e+00 : f32
    %5 = vector.broadcast %cst_5 : f32 to vector<8x46xf32>
    %c0_6 = arith.constant 0 : index
    %c0_7 = arith.constant 0 : index
    %c0_8 = arith.constant 0 : index
    %6 = vector.load %arg2[%c0_6, %c0_7, %c0_8] : memref<9x8x8xbf16, #tpu.memory_space<vmem>>, vector<1x8x8xbf16>
    %7 = vector.shape_cast %6 : vector<1x8x8xbf16> to vector<8x8xbf16>
    %c0_9 = arith.constant 0 : index
    %c0_10 = arith.constant 0 : index
    %8 = vector.load %arg5[%c0_9, %c0_10] : memref<8x64xbf16, #tpu.memory_space<vmem>>, vector<8x46xbf16>
    %cst_11 = arith.constant dense<0.000000e+00> : vector<8x46xf32>
    %9 = tpu.matmul %7, %8, %cst_11 {dimension_numbers = #tpu.dot_dimension_numbers<[1], [0], [0], [1], [0, 0, 1, 1], [], []>} : vector<8x8xbf16>, vector<8x46xbf16>, vector<8x46xf32> -> vector<8x46xf32>
    %10 = arith.addf %5, %9 : vector<8x46xf32>
    %c1 = arith.constant 1 : index
    %c0_12 = arith.constant 0 : index
    %c0_13 = arith.constant 0 : index
    %11 = vector.load %arg2[%c1, %c0_12, %c0_13] : memref<9x8x8xbf16, #tpu.memory_space<vmem>>, vector<1x8x8xbf16>
    %12 = vector.shape_cast %11 : vector<1x8x8xbf16> to vector<8x8xbf16>
    %c0_14 = arith.constant 0 : index
    %c1_15 = arith.constant 1 : index
    %13 = vector.load %arg5[%c0_14, %c1_15] : memref<8x64xbf16, #tpu.memory_space<vmem>>, vector<8x46xbf16>
    %cst_16 = arith.constant dense<0.000000e+00> : vector<8x46xf32>
    %14 = tpu.matmul %12, %13, %cst_16 {dimension_numbers = #tpu.dot_dimension_numbers<[1], [0], [0], [1], [0, 0, 1, 1], [], []>} : vector<8x8xbf16>, vector<8x46xbf16>, vector<8x46xf32> -> vector<8x46xf32>
    %15 = arith.addf %10, %14 : vector<8x46xf32>
    %c2 = arith.constant 2 : index
    %c0_17 = arith.constant 0 : index
    %c0_18 = arith.constant 0 : index
    %16 = vector.load %arg2[%c2, %c0_17, %c0_18] : memref<9x8x8xbf16, #tpu.memory_space<vmem>>, vector<1x8x8xbf16>
    %17 = vector.shape_cast %16 : vector<1x8x8xbf16> to vector<8x8xbf16>
    %c0_19 = arith.constant 0 : index
    %c2_20 = arith.constant 2 : index
    %18 = vector.load %arg5[%c0_19, %c2_20] : memref<8x64xbf16, #tpu.memory_space<vmem>>, vector<8x46xbf16>
    %cst_21 = arith.constant dense<0.000000e+00> : vector<8x46xf32>
    %19 = tpu.matmul %17, %18, %cst_21 {dimension_numbers = #tpu.dot_dimension_numbers<[1], [0], [0], [1], [0, 0, 1, 1], [], []>} : vector<8x8xbf16>, vector<8x46xbf16>, vector<8x46xf32> -> vector<8x46xf32>
    %20 = arith.addf %15, %19 : vector<8x46xf32>
    %c3_22 = arith.constant 3 : index
    %c0_23 = arith.constant 0 : index
    %c0_24 = arith.constant 0 : index
    %21 = vector.load %arg2[%c3_22, %c0_23, %c0_24] : memref<9x8x8xbf16, #tpu.memory_space<vmem>>, vector<1x8x8xbf16>
    %22 = vector.shape_cast %21 : vector<1x8x8xbf16> to vector<8x8xbf16>
    %c0_25 = arith.constant 0 : index
    %c8 = arith.constant 8 : index
    %23 = vector.load %arg5[%c0_25, %c8] : memref<8x64xbf16, #tpu.memory_space<vmem>>, vector<8x46xbf16>
    %cst_26 = arith.constant dense<0.000000e+00> : vector<8x46xf32>
    %24 = tpu.matmul %22, %23, %cst_26 {dimension_numbers = #tpu.dot_dimension_numbers<[1], [0], [0], [1], [0, 0, 1, 1], [], []>} : vector<8x8xbf16>, vector<8x46xbf16>, vector<8x46xf32> -> vector<8x46xf32>
    %25 = arith.addf %20, %24 : vector<8x46xf32>
    %c4 = arith.constant 4 : index
    %c0_27 = arith.constant 0 : index
    %c0_28 = arith.constant 0 : index
    %26 = vector.load %arg2[%c4, %c0_27, %c0_28] : memref<9x8x8xbf16, #tpu.memory_space<vmem>>, vector<1x8x8xbf16>
    %27 = vector.shape_cast %26 : vector<1x8x8xbf16> to vector<8x8xbf16>
    %c0_29 = arith.constant 0 : index
    %c9 = arith.constant 9 : index
    %28 = vector.load %arg5[%c0_29, %c9] : memref<8x64xbf16, #tpu.memory_space<vmem>>, vector<8x46xbf16>
    %cst_30 = arith.constant dense<0.000000e+00> : vector<8x46xf32>
    %29 = tpu.matmul %27, %28, %cst_30 {dimension_numbers = #tpu.dot_dimension_numbers<[1], [0], [0], [1], [0, 0, 1, 1], [], []>} : vector<8x8xbf16>, vector<8x46xbf16>, vector<8x46xf32> -> vector<8x46xf32>
    %30 = arith.addf %25, %29 : vector<8x46xf32>
    %c5 = arith.constant 5 : index
    %c0_31 = arith.constant 0 : index
    %c0_32 = arith.constant 0 : index
    %31 = vector.load %arg2[%c5, %c0_31, %c0_32] : memref<9x8x8xbf16, #tpu.memory_space<vmem>>, vector<1x8x8xbf16>
    %32 = vector.shape_cast %31 : vector<1x8x8xbf16> to vector<8x8xbf16>
    %c0_33 = arith.constant 0 : index
    %c10 = arith.constant 10 : index
    %33 = vector.load %arg5[%c0_33, %c10] : memref<8x64xbf16, #tpu.memory_space<vmem>>, vector<8x46xbf16>
    %cst_34 = arith.constant dense<0.000000e+00> : vector<8x46xf32>
    %34 = tpu.matmul %32, %33, %cst_34 {dimension_numbers = #tpu.dot_dimension_numbers<[1], [0], [0], [1], [0, 0, 1, 1], [], []>} : vector<8x8xbf16>, vector<8x46xbf16>, vector<8x46xf32> -> vector<8x46xf32>
    %35 = arith.addf %30, %34 : vector<8x46xf32>
    %c6 = arith.constant 6 : index
    %c0_35 = arith.constant 0 : index
    %c0_36 = arith.constant 0 : index
    %36 = vector.load %arg2[%c6, %c0_35, %c0_36] : memref<9x8x8xbf16, #tpu.memory_space<vmem>>, vector<1x8x8xbf16>
    %37 = vector.shape_cast %36 : vector<1x8x8xbf16> to vector<8x8xbf16>
    %c0_37 = arith.constant 0 : index
    %c16 = arith.constant 16 : index
    %38 = vector.load %arg5[%c0_37, %c16] : memref<8x64xbf16, #tpu.memory_space<vmem>>, vector<8x46xbf16>
    %cst_38 = arith.constant dense<0.000000e+00> : vector<8x46xf32>
    %39 = tpu.matmul %37, %38, %cst_38 {dimension_numbers = #tpu.dot_dimension_numbers<[1], [0], [0], [1], [0, 0, 1, 1], [], []>} : vector<8x8xbf16>, vector<8x46xbf16>, vector<8x46xf32> -> vector<8x46xf32>
    %40 = arith.addf %35, %39 : vector<8x46xf32>
    %c7 = arith.constant 7 : index
    %c0_39 = arith.constant 0 : index
    %c0_40 = arith.constant 0 : index
    %41 = vector.load %arg2[%c7, %c0_39, %c0_40] : memref<9x8x8xbf16, #tpu.memory_space<vmem>>, vector<1x8x8xbf16>
    %42 = vector.shape_cast %41 : vector<1x8x8xbf16> to vector<8x8xbf16>
    %c0_41 = arith.constant 0 : index
    %c17 = arith.constant 17 : index
    %43 = vector.load %arg5[%c0_41, %c17] : memref<8x64xbf16, #tpu.memory_space<vmem>>, vector<8x46xbf16>
    %cst_42 = arith.constant dense<0.000000e+00> : vector<8x46xf32>
    %44 = tpu.matmul %42, %43, %cst_42 {dimension_numbers = #tpu.dot_dimension_numbers<[1], [0], [0], [1], [0, 0, 1, 1], [], []>} : vector<8x8xbf16>, vector<8x46xbf16>, vector<8x46xf32> -> vector<8x46xf32>
    %45 = arith.addf %40, %44 : vector<8x46xf32>
    %c8_43 = arith.constant 8 : index
    %c0_44 = arith.constant 0 : index
    %c0_45 = arith.constant 0 : index
    %46 = vector.load %arg2[%c8_43, %c0_44, %c0_45] : memref<9x8x8xbf16, #tpu.memory_space<vmem>>, vector<1x8x8xbf16>
    %47 = vector.shape_cast %46 : vector<1x8x8xbf16> to vector<8x8xbf16>
    %c0_46 = arith.constant 0 : index
    %c18 = arith.constant 18 : index
    %48 = vector.load %arg5[%c0_46, %c18] : memref<8x64xbf16, #tpu.memory_space<vmem>>, vector<8x46xbf16>
    %cst_47 = arith.constant dense<0.000000e+00> : vector<8x46xf32>
    %49 = tpu.matmul %47, %48, %cst_47 {dimension_numbers = #tpu.dot_dimension_numbers<[1], [0], [0], [1], [0, 0, 1, 1], [], []>} : vector<8x8xbf16>, vector<8x46xbf16>, vector<8x46xf32> -> vector<8x46xf32>
    %50 = arith.addf %45, %49 : vector<8x46xf32>
    %c0_48 = arith.constant 0 : index
    %c0_49 = arith.constant 0 : index
    %51 = vector.load %arg3[%c0_48, %c0_49] : memref<8x1xf32, #tpu.memory_space<vmem>>, vector<8x1xf32>
    %52 = vector.broadcast %51 : vector<8x1xf32> to vector<8x46xf32>
    %53 = arith.addf %50, %52 : vector<8x46xf32>
    %c0_50 = arith.constant 0 : index
    %c0_51 = arith.constant 0 : index
    %c0_52 = arith.constant 0 : index
    %54 = vector.load %arg4[%c0_50, %c0_51, %c0_52] : memref<1x8x128xf32, #tpu.memory_space<vmem>>, vector<1x8x46xf32>
    %55 = vector.shape_cast %54 : vector<1x8x46xf32> to vector<8x46xf32>
    %56 = vector.shape_cast %53 : vector<8x46xf32> to vector<1x8x46xf32>
    tpu.vector_store %arg4[%c0_50, %c0_51, %c0_52], %56 {strides = array<i32>} : memref<1x8x128xf32, #tpu.memory_space<vmem>>, vector<1x8x46xf32>,
    return
  }
  func.func @transform_0(%arg0: i32) -> (i32, i32, i32) {
    %c0_i32 = arith.constant 0 : i32
    %c0_i32_0 = arith.constant 0 : i32
    %c0_i32_1 = arith.constant 0 : i32
    return %arg0, %c0_i32, %c0_i32_0 : i32, i32, i32
  }
  func.func @transform_1(%arg0: i32) -> (i32, i32, i32) {
    %c0_i32 = arith.constant 0 : i32
    %c0_i32_0 = arith.constant 0 : i32
    %c0_i32_1 = arith.constant 0 : i32
    %c0_i32_2 = arith.constant 0 : i32
    return %c0_i32, %c0_i32_0, %c0_i32_1 : i32, i32, i32
  }
  func.func @transform_2(%arg0: i32) -> (i32, i32) {
    %c0_i32 = arith.constant 0 : i32
    %c0_i32_0 = arith.constant 0 : i32
    %c0_i32_1 = arith.constant 0 : i32
    return %c0_i32, %c0_i32_0 : i32, i32
  }
  func.func @transform_3(%arg0: i32) -> (i32, i32, i32) {
    %c0_i32 = arith.constant 0 : i32
    %c0_i32_0 = arith.constant 0 : i32
    %c0_i32_1 = arith.constant 0 : i32
    return %arg0, %c0_i32, %c0_i32_0 : i32, i32, i32
  }
}

</mosaic_0001>

<bundles_post_ra>
// kernel: model_forward.1
= control target key start
LH: loop header
LB: loop body
LE: loop exit
PB: predicated region body
PF: predicated region fallthrough
CT: control target
= control target key end

     0   :  { %s861_s12 = smov 0   ;;  %s957_s0 = inlined_call_operand.vmem [shape: bf16[2,3,64], index: 0, kind: input, shape index: {}]   ;;  %s958_s1 = inlined_call_operand.vmem [shape: bf16[9,8,8], index: 1, kind: input, shape index: {}]   ;;  %s959_s2 = inlined_call_operand.vmem [shape: f32[8,1], index: 2, kind: input, shape index: {}]   ;;  %s960_s3 = inlined_call_operand.vmem [shape: f32[2,8,128], index: 3, kind: output, shape index: {}]  }
   0x1 LB: > { %s702_s13 = sadd.s32 4294967295, %s828_s12   ;;  %p706_p0 = scmp.ge.s32.totalorder %s828_s12, 1  ;;  %s828_s12 = sphi %s861_s12, %s13_s12  }
   0x2   : > { %p136_p1 = scmp.lt.s32.totalorder %s828_s12, 3 }
   0x4   : > { %p137_p2 = pnand %p706_p0, %p136_p1 }
   0x5   : > { %p158_p3 = scmp.lt.s32.totalorder (!%p137_p2), %s702_s13, 1  ;;  %s832_s20 = smov (!%p137_p2), 127  }
   0x6   : > { %140 = sbr.rel (%p137_p2) target bundleno = 385 (0x181), region = 32  ;;  %s833_s21 = smov (!%p137_p2), 120  }
   0x7   : > { %s834_s22 = smov (!%p137_p2), 126   ;;  %s835_s23 = smov (!%p137_p2), 119  }
   0x8   : > { %s836_s24 = smov (!%p137_p2), 118   ;;  %s837_s25 = smov (!%p137_p2), 112  }
   0x9   : > { %s838_s26 = smov (!%p137_p2), 111   ;;  %s839_s27 = smov (!%p137_p2), 110  }
   0xb   : > { %vm168_vm0 = vcmask 517120   ;;  %vm169_vm1 = vsmask.f32 1280  ;;  %s962_s13 = smov (!%p158_p3, %s702_s13), 1  ;;  %v171_v0 = vld [vmem:[#allocation2] sm:$0x3] }
   0xc   : > { %s707_s14 = sshll.u32 %s962_s13, 1  ;;  %vm170_vm2 = vmand %vm168_vm0, %vm169_vm1  ;;  %vm174_vm3 = vcmask 519169   ;;  %vm175_vm4 = vsmask.f32 7942  ;;  %v830_v3 = vmov 0.0   ;;  %vm831_vm6 = vmmov 0  }
   0xd   : > { %s161_s17 = scalar_lea.vmem %s957_s0, %s707_s14  ;;  %vm176_vm5 = vmand %vm174_vm3, %vm175_vm4  ;;  %747 = vmatprep.subr.bf16.mxu0 %v830_v3  ;;  %753 = vmatprep.subr.bf16.mxu1 %v830_v3  ;;  %vm193_vm7 = vcmask 1043456   ;;  %vm189_vm8 = vcmask 64512   ;;  %v180_v9 = vld [vmem:[%s958_s1] sm:$0xf]  ;;  %v840_v11 = vmov 0   ;;  %vm647_vm9 = vcmask 375808  }
   0xe   : > { %v167_v1 = vld [vmem:[%s161_s17] sm:$0x3]  ;;  %749 = vmatprep.mubr.msk.bf16.mxu0 %vm831_vm6, %v830_v3  ;;  %755 = vmatprep.mubr.msk.bf16.mxu1 %vm831_vm6, %v830_v3  ;;  %v709_v16 = vld [vmem:[%s958_s1 + $0x4] sm:$0xf]  ;;  %v715_v17 = vld [vmem:[%s958_s1 + $0xc] sm:$0xf] }
   0xf   : > { %v172_v2 = vsel %vm170_vm2, %v167_v1, %v171_v0  ;;  %v640_v10 = vld [vmem:[%s959_s2] sm:$0xff]  ;;  %820 = vset.pattern.permute.xlu0 %v840_v11  ;;  %v713_v23 = vld [vmem:[%s958_s1 + $0x8] sm:$0xf]  ;;  %v719_v24 = vld [vmem:[%s958_s1 + $0x14] sm:$0xf] }
  0x10   : > { %173 = vst [vmem:[#allocation2] sm:$0x3] %v172_v2  ;;  %v717_v29 = vld [vmem:[%s958_s1 + $0x10] sm:$0xf]  ;;  %v723_v30 = vld [vmem:[%s958_s1 + $0x1c] sm:$0xf] }
  0x11   : > { %v721_v33 = vld [vmem:[%s958_s1 + $0x18] sm:$0xf]  ;;  %v725_v35 = vld [vmem:[%s958_s1 + $0x20] sm:$0xf] }
  0x17   : > { %v177_v4 = vld [vmem:[#allocation2] sm:$0xe] }
  0x18   : > { %v178_v5 = vsel %vm176_vm5, 0, %v177_v4 }
  0x19   : > { %179 = vst [vmem:[#allocation2] sm:$0xe] %v178_v5 }
  0x20   : > { %v181_v6 = vld [vmem:[#allocation2] sm:$0xf] }
  0x21   : > { %v710_v7 = vcombine.low %v181_v6, %v181_v6  ;;  %v241_v8 = vsel %vm193_vm7, %v181_v6, 0 }
  0x22   : > { %754 = vmatpush3.bf16.msra.mxu1 %v241_v8 }
  0x23   : > { %187 = vrot.lane.b32.xlu0 %v710_v7, %s832_s20  ;;  %336 = vrot.lane.b32.xlu1 %v710_v7, %s833_s21  ;;  %s708_s21 = sshll.u32 %s962_s13, 3 }
  0x24   : > { %765 = vmatprep.subr.bf16.mxu1 %v830_v3 }
  0x25   : > { %756 = vmatmul.mubr.msk.bf16.vlgmr.msra.gmra.mxu1 %vm189_vm8, %v180_v9 }
  0x26   : > { %767 = vmatprep.mubr.msk.bf16.mxu1 %vm831_vm6, %v830_v3 }
  0x27   : > { %285 = vrot.lane.b32.xlu0 %v710_v7, %s834_s22  ;;  %387 = vrot.lane.b32.xlu1 %v710_v7, %s835_s23 }
  0x2b   : > { %438 = vrot.lane.b32.xlu0 %v710_v7, %s836_s24  ;;  %489 = vrot.lane.b32.xlu1 %v710_v7, %s837_s25  ;;  %s165_s24 = scalar_lea.vmem %s960_s3, %s708_s21 }
  0x2f   : > { %540 = vrot.lane.b32.xlu0 %v710_v7, %s838_s26  ;;  %591 = vrot.lane.b32.xlu1 %v710_v7, %s839_s27 }
  0x33   : > { %643 = vperm.xlu0 %820, %v640_v10  }
  0x95   : > { %v188_v12 = vpop.permute.xlu0 %187  ;;  %v337_v13 = vpop.permute.xlu1 %336 }
  0x96   : > { %v195_v14 = vsel %vm193_vm7, %v188_v12, 0  ;;  %v342_v15 = vsel %vm193_vm7, %v337_v13, 0 }
  0x97   : > { %748 = vmatpush3.bf16.msra.mxu0 %v195_v14  ;;  %766 = vmatpush3.bf16.msra.mxu1 %v342_v15 }
  0x98   : > { %759 = vmatprep.subr.bf16.mxu0 %v830_v3  ;;  %777 = vmatprep.subr.bf16.mxu1 %v830_v3 }
  0x99   : > { %v286_v18 = vpop.permute.xlu0 %285  ;;  %v388_v20 = vpop.permute.xlu1 %387 }
  0x9a   : > { %v291_v19 = vsel %vm193_vm7, %v286_v18, 0  ;;  %750 = vmatmul.mubr.msk.bf16.vlgmr.msra.gmra.mxu0 %vm189_vm8, %v709_v16  ;;  %768 = vmatmul.mubr.msk.bf16.vlgmr.msra.gmra.mxu1 %vm189_vm8, %v715_v17  ;;  %v393_v25 = vsel %vm193_vm7, %v388_v20, 0 }
  0x9b   : > { %760 = vmatpush3.bf16.msra.mxu0 %v291_v19  ;;  %761 = vmatprep.mubr.msk.bf16.mxu0 %vm831_vm6, %v830_v3 }
  0x9c   : > { %771 = vmatprep.subr.bf16.mxu0 %v830_v3  ;;  %779 = vmatprep.mubr.msk.bf16.mxu1 %vm831_vm6, %v830_v3 }
  0x9d   : > { %v439_v21 = vpop.permute.xlu0 %438  ;;  %v490_v28 = vpop.permute.xlu1 %489 }
  0x9e   : > { %v444_v22 = vsel %vm193_vm7, %v439_v21, 0  ;;  %v495_v31 = vsel %vm193_vm7, %v490_v28, 0 }
  0x9f   : > { %778 = vmatpush3.bf16.msra.mxu1 %v444_v22 }
  0xa0   : > { %789 = vmatprep.subr.bf16.mxu1 %v830_v3 }
  0xa1   : > { %v541_v26 = vpop.permute.xlu0 %540  ;;  %v592_v32 = vpop.permute.xlu1 %591 }
  0xa2   : > { %762 = vmatmul.mubr.msk.bf16.vlgmr.msra.gmra.mxu0 %vm189_vm8, %v713_v23  ;;  %780 = vmatmul.mubr.msk.bf16.vlgmr.msra.gmra.mxu1 %vm189_vm8, %v719_v24  ;;  %v546_v27 = vsel %vm193_vm7, %v541_v26, 0  ;;  %v597_v34 = vsel %vm193_vm7, %v592_v32, 0 }
  0xa3   : > { %772 = vmatpush3.bf16.msra.mxu0 %v393_v25  ;;  %773 = vmatprep.mubr.msk.bf16.mxu0 %vm831_vm6, %v830_v3 }
  0xa4   : > { %783 = vmatprep.subr.bf16.mxu0 %v830_v3  ;;  %790 = vmatpush3.bf16.msra.mxu1 %v546_v27 }
  0xa5   : > { %791 = vmatprep.mubr.msk.bf16.mxu1 %vm831_vm6, %v830_v3 }
  0xaa   : > { %774 = vmatmul.mubr.msk.bf16.vlgmr.msra.gmra.mxu0 %vm189_vm8, %v717_v29  ;;  %792 = vmatmul.mubr.msk.bf16.vlgmr.msra.gmra.mxu1 %vm189_vm8, %v723_v30 }
  0xab   : > { %784 = vmatpush3.bf16.msra.mxu0 %v495_v31  ;;  %785 = vmatprep.mubr.msk.bf16.mxu0 %vm831_vm6, %v830_v3 }
  0xac   : > { %795 = vmatprep.subr.bf16.mxu0 %v830_v3 }
  0xae   : > { %v644_v12 = vpop.permute.xlu0 %643 }
  0xb2   : > { %786 = vmatmul.mubr.msk.bf16.vlgmr.msra.gmra.mxu0 %vm189_vm8, %v721_v33 }
  0xb3   : > { %796 = vmatpush3.bf16.msra.mxu0 %v597_v34  ;;  %797 = vmatprep.mubr.msk.bf16.mxu0 %vm831_vm6, %v830_v3 }
  0xba   : > { %798 = vmatmul.mubr.msk.bf16.vlgmr.msra.gmra.mxu0 %vm189_vm8, %v725_v35 }
  0xe5   : > { %v277_v36 = vpop.f32.mrf.mxu1 }
  0xe7   : > { %v757_v37 = vpop.f32.mrf.mxu1 }
  0xe9   : > { %v280_v38 = vpop.f32.mrf.mxu1 }
  0xeb   : > { %v758_v39 = vpop.f32.mrf.mxu1 }
 0x15a   : > { %v231_v40 = vpop.f32.mrf.mxu0  ;;  %v378_v41 = vpop.f32.mrf.mxu1 }
 0x15b   : > { %v278_v54 = vadd.f32 %v277_v36, %v231_v40 }
 0x15c   : > { %v751_v42 = vpop.f32.mrf.mxu0  ;;  %v769_v43 = vpop.f32.mrf.mxu1 }
 0x15e   : > { %v234_v44 = vpop.f32.mrf.mxu0  ;;  %v381_v45 = vpop.f32.mrf.mxu1 }
 0x160   : > { %v752_v46 = vpop.f32.mrf.mxu0  ;;  %v770_v47 = vpop.f32.mrf.mxu1 }
 0x162   : > { %v327_v48 = vpop.f32.mrf.mxu0  ;;  %v480_v49 = vpop.f32.mrf.mxu1 }
 0x163   : > { %v333_v57 = vadd.f32 %v327_v48, %v278_v54 }
 0x164   : > { %v763_v50 = vpop.f32.mrf.mxu0  ;;  %v781_v51 = vpop.f32.mrf.mxu1 }
 0x165   : > { %v384_v62 = vadd.f32 %v378_v41, %v333_v57 }
 0x166   : > { %v330_v52 = vpop.f32.mrf.mxu0  ;;  %v483_v53 = vpop.f32.mrf.mxu1 }
 0x168   : > { %v764_v55 = vpop.f32.mrf.mxu0  ;;  %v782_v56 = vpop.f32.mrf.mxu1 }
 0x16a   : > { %v429_v58 = vpop.f32.mrf.mxu0  ;;  %v582_v59 = vpop.f32.mrf.mxu1 }
 0x16b   : > { %v435_v1 = vadd.f32 %v429_v58, %v384_v62 }
 0x16c   : > { %v775_v60 = vpop.f32.mrf.mxu0  ;;  %v793_v61 = vpop.f32.mrf.mxu1 }
 0x16d   : > { %v486_v5 = vadd.f32 %v480_v49, %v435_v1 }
 0x16e   : > { %v432_v63 = vpop.f32.mrf.mxu0  ;;  %v585_v0 = vpop.f32.mrf.mxu1 }
 0x170   : > { %v776_v2 = vpop.f32.mrf.mxu0  ;;  %v794_v3 = vpop.f32.mrf.mxu1 }
 0x172   : > { %v531_v4 = vpop.f32.mrf.mxu0 }
 0x173   : > { %v537_v7 = vadd.f32 %v531_v4, %v486_v5 }
 0x174   : > { %v787_v6 = vpop.f32.mrf.mxu0 }
 0x175   : > { %v588_v10 = vadd.f32 %v582_v59, %v537_v7 }
 0x176   : > { %v534_v8 = vpop.f32.mrf.mxu0 }
 0x178   : > { %v788_v9 = vpop.f32.mrf.mxu0 }
 0x17a   : > { %v633_v11 = vpop.f32.mrf.mxu0 }
 0x17b   : > { %v639_v13 = vadd.f32 %v633_v11, %v588_v10 }
 0x17c   : > { %v799_v14 = vpop.f32.mrf.mxu0 }
 0x17d   : > { %v646_v15 = vadd.f32 %v644_v12, %v639_v13 }
 0x17e   : > { %v636_v16 = vpop.f32.mrf.mxu0 }
 0x17f   : > { %648 = vst.msk [vmem:[%s165_s24] sm:$0xff] %vm647_vm9, %v646_v15 }
 0x180   : > { %v800_v17 = vpop.f32.mrf.mxu0 }
 0x181 PF: > { %s13_s12 = sadd.s32 1, %s828_s12  }
 0x182   : > { %p10_p4 = scmp.ge.s32.totalorder %s13_s12, 4  }
 0x184   :  { %12 = sbr.rel (!%p10_p4) target bundleno = 1 (0x1), region = 70 }

</bundles_post_ra>
